<compile_context>
chip_gen: v7x
topology: tpu7x:2x2x1
jax: 0.10.0
libtpu: 0.0.40
codegen_flags: <defaults>
</compile_context>

<pallas_src>
import functools
import math

import jax
import jax.numpy as jnp
from jax.experimental import pallas as pl
from jax.experimental.pallas import tpu as pltpu


def _round_up(x, m):
    return ((x + m - 1) // m) * m


def _pick_group_size(n_head, d_k, target_lanes=128):
    """Smallest divisor of n_head whose group width fills >= target_lanes."""
    for g in range(1, n_head + 1):
        if n_head % g == 0 and g * d_k >= target_lanes:
            return g
    return n_head


def mha_kernel(q_ref, kpt_ref, vpt_ref, wqt_ref, fc_ref, lnw_ref, lnb_ref,
               *refs, g_heads, d_k, d_v, eps, scale, emit_att):
    """One grid step == (batch element, q-row tile, head group)."""
    if emit_att:
        o_ref, att_ref, acc_ref = refs
    else:
        o_ref, acc_ref = refs
        att_ref = None

    g = pl.program_id(2)
    n_groups = pl.num_programs(2)

    q_bf = q_ref[0]                                        # (tq, d_model) bf16

    # Q projection for the whole head group: ONE wide NN matmul on the MXU.
    # wqt_ref[0]: (d_model, G*d_k).  1/sqrt(d_k) folded in before the bf16 cast.
    qg = jax.lax.dot_general(
        q_bf, wqt_ref[0],
        dimension_numbers=(((1,), (0,)), ((), ())),
        preferred_element_type=jnp.float32)                # (tq, G*d_k) f32
    qg = (qg * scale).astype(jnp.bfloat16)

    # Per-head attention within the group: small unrolled loop, 2-D dots only,
    # no in-kernel weight transposes (weights pre-laid-out in the wrapper).
    part = None
    for j in range(g_heads):
        qj = qg[:, j * d_k:(j + 1) * d_k]                  # (tq, d_k)
        kj = kpt_ref[0, j]                                 # (d_k, Lk) lane-dense
        vj = vpt_ref[0, j]                                 # (d_v, Lk) lane-dense

        # scores = qj @ kj  (NN), f32 accumulation on the MXU.
        s = jax.lax.dot_general(
            qj, kj, dimension_numbers=(((1,), (0,)), ((), ())),
            preferred_element_type=jnp.float32)            # (tq, Lk)

        # Numerically-stable softmax in f32; exact divide (rows sum to 1).
        s = s - jnp.max(s, axis=-1, keepdims=True)
        e = jnp.exp(s)
        att = e / jnp.sum(e, axis=-1, keepdims=True)       # (tq, Lk)

        if emit_att:
            att_ref[0, j] = att.astype(att_ref.dtype)

        # ctx = att @ vj^T (NT) -> (tq, d_v);  head's slice of out-proj (NN).
        ctx = jax.lax.dot_general(
            att.astype(jnp.bfloat16), vj,
            dimension_numbers=(((1,), (1,)), ((), ())),
            preferred_element_type=jnp.float32)            # (tq, d_v)
        pj = jax.lax.dot_general(
            ctx.astype(jnp.bfloat16), fc_ref[0, j],
            dimension_numbers=(((1,), (0,)), ((), ())),
            preferred_element_type=jnp.float32)            # (tq, d_model)
        part = pj if part is None else part + pj

    # Accumulate head-group contributions in f32 scratch; residual at group 0.
    @pl.when(g == 0)
    def _():
        acc_ref[...] = q_bf.astype(jnp.float32)

    acc_ref[...] += part

    # Finalize at the last group: LayerNorm (dropout == identity at eval).
    @pl.when(g == n_groups - 1)
    def _():
        y = acc_ref[...]
        mean = jnp.mean(y, axis=-1, keepdims=True)
        cen = y - mean
        var = jnp.mean(cen * cen, axis=-1, keepdims=True)
        yn = cen * jax.lax.rsqrt(var + eps)
        o_ref[0] = (yn * lnw_ref[...] + lnb_ref[...]).astype(o_ref.dtype)


def multi_head_attention(q, k, v, params, *, n_head, d_k, d_v, eps=1e-6,
                         return_att=True, att_dtype=jnp.float32):
    wq_w, wk_w, wv_w, fc_w, ln_w, ln_b = params
    B, Lq, d_model = q.shape
    Lk = k.shape[1]
    assert v.shape[1] == Lk

    G = _pick_group_size(n_head, d_k)
    n_groups = n_head // G
    bf = jnp.bfloat16

    # ---------- one-time XLA-level preprocessing (outside the kernel) ----------
    # Pre-project K / V with two wide matmuls; store per-head, key-major
    # (lane-dense minor dim = Lk) bf16 blocks: (B*n_groups, G, d_k|d_v, Lk).
    kproj = jax.lax.dot_general(
        k.astype(bf), wk_w.astype(bf),
        dimension_numbers=(((2,), (1,)), ((), ())),
        preferred_element_type=jnp.float32)                # (B, Lk, H*d_k)
    vproj = jax.lax.dot_general(
        v.astype(bf), wv_w.astype(bf),
        dimension_numbers=(((2,), (1,)), ((), ())),
        preferred_element_type=jnp.float32)                # (B, Lk, H*d_v)
    kpt = kproj.astype(bf).reshape(B, Lk, n_head, d_k).transpose(0, 2, 3, 1)
    kpt = kpt.reshape(B * n_groups, G, d_k, Lk)
    vpt = vproj.astype(bf).reshape(B, Lk, n_head, d_v).transpose(0, 2, 3, 1)
    vpt = vpt.reshape(B * n_groups, G, d_v, Lk)

    # Per-group Q weights (transposed) and per-head output-projection blocks.
    wqt_g = wq_w.astype(bf).reshape(n_groups, G * d_k, d_model).transpose(0, 2, 1)
    fc_g = fc_w.T.astype(bf).reshape(n_groups, G, d_v, d_model)
    ln_w2 = ln_w.reshape(1, d_model).astype(jnp.float32)
    ln_b2 = ln_b.reshape(1, d_model).astype(jnp.float32)

    # Query-row tiling with cdiv + padding (parallel q axis for any Lq).
    tq = min(256, _round_up(Lq, 8))
    Lq_pad = _round_up(Lq, tq)
    nq = Lq_pad // tq
    q_bf = q.astype(bf)
    if Lq_pad != Lq:
        q_bf = jnp.pad(q_bf, ((0, 0), (0, Lq_pad - Lq), (0, 0)))

    kernel = functools.partial(
        mha_kernel, g_heads=G, d_k=d_k, d_v=d_v, eps=eps,
        scale=1.0 / math.sqrt(d_k), emit_att=return_att)

    out_shapes = [jax.ShapeDtypeStruct((B, Lq_pad, d_model), q.dtype)]
    out_specs = [pl.BlockSpec((1, tq, d_model), lambda b, i, g: (b, i, 0))]
    if return_att:
        out_shapes.append(
            jax.ShapeDtypeStruct((B, n_head, Lq_pad, Lk), att_dtype))
        out_specs.append(
            pl.BlockSpec((1, G, tq, Lk), lambda b, i, g: (b, g, i, 0)))

    results = pl.pallas_call(
        kernel,
        out_shape=tuple(out_shapes),
        grid_spec=pltpu.PrefetchScalarGridSpec(
            num_scalar_prefetch=0,
            grid=(B, nq, n_groups),          # head-group axis innermost (reduction)
            in_specs=[
                pl.BlockSpec((1, tq, d_model), lambda b, i, g: (b, i, 0)),
                pl.BlockSpec((1, G, d_k, Lk),
                             lambda b, i, g: (b * n_groups + g, 0, 0, 0)),
                pl.BlockSpec((1, G, d_v, Lk),
                             lambda b, i, g: (b * n_groups + g, 0, 0, 0)),
                pl.BlockSpec((1, d_model, G * d_k), lambda b, i, g: (g, 0, 0)),
                pl.BlockSpec((1, G, d_v, d_model), lambda b, i, g: (g, 0, 0, 0)),
                pl.BlockSpec((1, d_model), lambda b, i, g: (0, 0)),
                pl.BlockSpec((1, d_model), lambda b, i, g: (0, 0)),
            ],
            out_specs=tuple(out_specs),
            scratch_shapes=[pltpu.VMEM((tq, d_model), jnp.float32)],
        ),
        compiler_params=pltpu.CompilerParams(
            dimension_semantics=("parallel", "parallel", "arbitrary"),
            # Budgeted to leave headroom on v7x's 64 MiB physical VMEM
            # (v5e / v6e have 128 MiB and simply get deeper pipelining).
            vmem_limit_bytes=48 * 1024 * 1024,
        ),
    )(q_bf, kpt, vpt, wqt_g, fc_g, ln_w2, ln_b2)

    out = results[0][:, :Lq, :]
    if return_att:
        att = results[1][:, :, :Lq, :]
        return out, att
    return out, None


def reference_mha(q, k, v, params, *, n_head, d_k, d_v, eps=1e-6):
    """Pure-JAX f32 reference mirroring the PyTorch forward (mask=None, eval)."""
    wq_w, wk_w, wv_w, fc_w, ln_w, ln_b = params
    B, L, d_model = q.shape
    wq = (q @ wq_w.T).reshape(B, L, n_head, d_k).transpose(0, 2, 1, 3)
    wk = (k @ wk_w.T).reshape(B, L, n_head, d_k).transpose(0, 2, 1, 3)
    wv = (v @ wv_w.T).reshape(B, L, n_head, d_v).transpose(0, 2, 1, 3)
    scores = jnp.einsum("bhqd,bhkd->bhqk", wq, wk) / math.sqrt(d_k)
    att = jax.nn.softmax(scores, axis=-1)
    ctx = jnp.einsum("bhqk,bhkd->bhqd", att, wv)
    ctx = ctx.transpose(0, 2, 1, 3).reshape(B, L, n_head * d_v)
    out = ctx @ fc_w.T
    y = out + q
    mean = y.mean(-1, keepdims=True)
    var = ((y - mean) ** 2).mean(-1, keepdims=True)
    y = (y - mean) / jnp.sqrt(var + eps) * ln_w + ln_b
    return y, att


if __name__ == "__main__":
    # Small shapes consistent with the module.
    B, L = 2, 8
    d_model, n_head, d_k, d_v = 32, 4, 8, 8

    key = jax.random.PRNGKey(0)
    kq, kk, kv, k1, k2, k3, k4 = jax.random.split(key, 7)

    q = jax.random.normal(kq, (B, L, d_model), dtype=jnp.float32)
    k = jax.random.normal(kk, (B, L, d_model), dtype=jnp.float32)
    v = jax.random.normal(kv, (B, L, d_model), dtype=jnp.float32)

    # Deterministic parameter init (PyTorch weight convention: [out, in]).
    wq_w = jax.random.normal(k1, (n_head * d_k, d_model), dtype=jnp.float32) * 0.1
    wk_w = jax.random.normal(k2, (n_head * d_k, d_model), dtype=jnp.float32) * 0.1
    wv_w = jax.random.normal(k3, (n_head * d_v, d_model), dtype=jnp.float32) * 0.1
    fc_w = jax.random.normal(k4, (d_model, n_head * d_v), dtype=jnp.float32) * 0.1
    ln_w = jnp.ones((d_model,), dtype=jnp.float32)
    ln_b = jnp.zeros((d_model,), dtype=jnp.float32)
    params = (wq_w, wk_w, wv_w, fc_w, ln_w, ln_b)

    out, att = multi_head_attention(q, k, v, params,
                                    n_head=n_head, d_k=d_k, d_v=d_v)
    out = jax.block_until_ready(out)
    att = jax.block_until_ready(att)

    ref_out, ref_att = reference_mha(q, k, v, params,
                                     n_head=n_head, d_k=d_k, d_v=d_v)
    assert out.shape == (B, L, d_model)
    assert att.shape == (B, n_head, L, L)
    # bf16 MXU operands / bf16 input feed -> compare against the f32 reference
    # with correspondingly relaxed tolerances.
    assert jnp.allclose(att, ref_att, atol=2e-2, rtol=2e-2)
    assert jnp.allclose(out, ref_out, atol=5e-2, rtol=5e-2)

    print("KERNEL_OK")
</pallas_src>

<mosaic_0001>
module attributes {stable_mosaic.version = 11 : i64} {
  func.func @mha_kernel(%arg0: i32, %arg1: i32, %arg2: i32, %arg3: memref<1x8x32xbf16, #tpu.memory_space<vmem>>, %arg4: memref<1x4x8x8xbf16, #tpu.memory_space<vmem>>, %arg5: memref<1x4x8x8xbf16, #tpu.memory_space<vmem>>, %arg6: memref<1x32x32xbf16, #tpu.memory_space<vmem>>, %arg7: memref<1x4x8x32xbf16, #tpu.memory_space<vmem>>, %arg8: memref<1x32xf32, #tpu.memory_space<vmem>>, %arg9: memref<1x32xf32, #tpu.memory_space<vmem>>, %arg10: memref<1x8x32xf32, #tpu.memory_space<vmem>>, %arg11: memref<1x4x8x8xf32, #tpu.memory_space<vmem>>, %arg12: memref<8x32xf32, #tpu.memory_space<vmem>>) attributes {dimension_semantics = [#tpu.dimension_semantics<parallel>, #tpu.dimension_semantics<parallel>, #tpu.dimension_semantics<arbitrary>], iteration_bounds = array<i64: 2, 1, 1>, scalar_prefetch = 0 : i64, scratch_operands = 1 : i64, tpu.core_type = #tpu.core_type<tc>, window_params = [{transform_indices = @transform_0, window_bounds = array<i64: 1, 8, 32>}, {transform_indices = @transform_1, window_bounds = array<i64: 1, 4, 8, 8>}, {transform_indices = @transform_2, window_bounds = array<i64: 1, 4, 8, 8>}, {transform_indices = @transform_3, window_bounds = array<i64: 1, 32, 32>}, {transform_indices = @transform_4, window_bounds = array<i64: 1, 4, 8, 32>}, {pipeline_mode = #tpu.pipeline_mode<synchronous>, transform_indices = @transform_5, window_bounds = array<i64: 1, 32>}, {pipeline_mode = #tpu.pipeline_mode<synchronous>, transform_indices = @transform_6, window_bounds = array<i64: 1, 32>}, {transform_indices = @transform_7, window_bounds = array<i64: 1, 8, 32>}, {transform_indices = @transform_8, window_bounds = array<i64: 1, 4, 8, 8>}]} {
    %c0 = arith.constant 0 : index
    %c0_0 = arith.constant 0 : index
    %c0_1 = arith.constant 0 : index
    %0 = vector.load %arg3[%c0, %c0_0, %c0_1] : memref<1x8x32xbf16, #tpu.memory_space<vmem>>, vector<1x8x32xbf16>
    %1 = vector.shape_cast %0 : vector<1x8x32xbf16> to vector<8x32xbf16>
    %c0_2 = arith.constant 0 : index
    %c0_3 = arith.constant 0 : index
    %c0_4 = arith.constant 0 : index
    %2 = vector.load %arg6[%c0_2, %c0_3, %c0_4] : memref<1x32x32xbf16, #tpu.memory_space<vmem>>, vector<1x32x32xbf16>
    %3 = vector.shape_cast %2 : vector<1x32x32xbf16> to vector<32x32xbf16>
    %cst = arith.constant dense<0.000000e+00> : vector<8x32xf32>
    %4 = tpu.matmul %1, %3, %cst {dimension_numbers = #tpu.dot_dimension_numbers<[1], [0], [0], [1], [0, 0, 1, 1], [], []>} : vector<8x32xbf16>, vector<32x32xbf16>, vector<8x32xf32> -> vector<8x32xf32>
    %cst_5 = arith.constant 0.353553385 : f32
    %5 = vector.broadcast %cst_5 : f32 to vector<8x32xf32>
    %6 = arith.mulf %4, %5 : vector<8x32xf32>
    %7 = arith.truncf %6 : vector<8x32xf32> to vector<8x32xbf16>
    %8 = vector.extract_strided_slice %7 {offsets = [0, 0], sizes = [8, 8], strides = [1, 1]} : vector<8x32xbf16> to vector<8x8xbf16>
    %c0_6 = arith.constant 0 : index
    %c0_7 = arith.constant 0 : index
    %c0_8 = arith.constant 0 : index
    %c0_9 = arith.constant 0 : index
    %9 = vector.load %arg4[%c0_6, %c0_7, %c0_8, %c0_9] : memref<1x4x8x8xbf16, #tpu.memory_space<vmem>>, vector<1x1x8x8xbf16>
    %10 = vector.shape_cast %9 : vector<1x1x8x8xbf16> to vector<8x8xbf16>
    %c0_10 = arith.constant 0 : index
    %c0_11 = arith.constant 0 : index
    %c0_12 = arith.constant 0 : index
    %c0_13 = arith.constant 0 : index
    %11 = vector.load %arg5[%c0_10, %c0_11, %c0_12, %c0_13] : memref<1x4x8x8xbf16, #tpu.memory_space<vmem>>, vector<1x1x8x8xbf16>
    %12 = vector.shape_cast %11 : vector<1x1x8x8xbf16> to vector<8x8xbf16>
    %cst_14 = arith.constant dense<0.000000e+00> : vector<8x8xf32>
    %13 = tpu.matmul %8, %10, %cst_14 {dimension_numbers = #tpu.dot_dimension_numbers<[1], [0], [0], [1], [0, 0, 1, 1], [], []>} : vector<8x8xbf16>, vector<8x8xbf16>, vector<8x8xf32> -> vector<8x8xf32>
    %cst_15 = arith.constant dense<0xFF800000> : vector<8xf32>
    %14 = vector.multi_reduction <maximumf>, %13, %cst_15 [1] : vector<8x8xf32> to vector<8xf32>
    %15 = vector.shape_cast %14 : vector<8xf32> to vector<8x1xf32>
    %16 = vector.broadcast %15 : vector<8x1xf32> to vector<8x8xf32>
    %17 = arith.subf %13, %16 : vector<8x8xf32>
    %18 = math.exp %17 : vector<8x8xf32>
    %cst_16 = arith.constant dense<0.000000e+00> : vector<8xf32>
    %19 = vector.multi_reduction <add>, %18, %cst_16 [1] : vector<8x8xf32> to vector<8xf32>
    %20 = vector.shape_cast %19 : vector<8xf32> to vector<8x1xf32>
    %21 = vector.broadcast %20 : vector<8x1xf32> to vector<8x8xf32>
    %22 = arith.divf %18, %21 : vector<8x8xf32>
    %c0_17 = arith.constant 0 : index
    %c0_18 = arith.constant 0 : index
    %c0_19 = arith.constant 0 : index
    %c0_20 = arith.constant 0 : index
    %23 = vector.load %arg11[%c0_17, %c0_18, %c0_19, %c0_20] : memref<1x4x8x8xf32, #tpu.memory_space<vmem>>, vector<1x1x8x8xf32>
    %24 = vector.shape_cast %23 : vector<1x1x8x8xf32> to vector<8x8xf32>
    %25 = vector.shape_cast %22 : vector<8x8xf32> to vector<1x1x8x8xf32>
    tpu.vector_store %arg11[%c0_17, %c0_18, %c0_19, %c0_20], %25 {strides = array<i32>} : memref<1x4x8x8xf32, #tpu.memory_space<vmem>>, vector<1x1x8x8xf32>,
    %26 = arith.truncf %22 : vector<8x8xf32> to vector<8x8xbf16>
    %cst_21 = arith.constant dense<0.000000e+00> : vector<8x8xf32>
    %27 = tpu.matmul %26, %12, %cst_21 {dimension_numbers = #tpu.dot_dimension_numbers<[1], [1], [0], [0], [0, 0, 1, 0], [], []>} : vector<8x8xbf16>, vector<8x8xbf16>, vector<8x8xf32> -> vector<8x8xf32>
    %28 = arith.truncf %27 : vector<8x8xf32> to vector<8x8xbf16>
    %c0_22 = arith.constant 0 : index
    %c0_23 = arith.constant 0 : index
    %c0_24 = arith.constant 0 : index
    %c0_25 = arith.constant 0 : index
    %29 = vector.load %arg7[%c0_22, %c0_23, %c0_24, %c0_25] : memref<1x4x8x32xbf16, #tpu.memory_space<vmem>>, vector<1x1x8x32xbf16>
    %30 = vector.shape_cast %29 : vector<1x1x8x32xbf16> to vector<8x32xbf16>
    %cst_26 = arith.constant dense<0.000000e+00> : vector<8x32xf32>
    %31 = tpu.matmul %28, %30, %cst_26 {dimension_numbers = #tpu.dot_dimension_numbers<[1], [0], [0], [1], [0, 0, 1, 1], [], []>} : vector<8x8xbf16>, vector<8x32xbf16>, vector<8x32xf32> -> vector<8x32xf32>
    %32 = vector.extract_strided_slice %7 {offsets = [0, 8], sizes = [8, 8], strides = [1, 1]} : vector<8x32xbf16> to vector<8x8xbf16>
    %c0_27 = arith.constant 0 : index
    %c1 = arith.constant 1 : index
    %c0_28 = arith.constant 0 : index
    %c0_29 = arith.constant 0 : index
    %33 = vector.load %arg4[%c0_27, %c1, %c0_28, %c0_29] : memref<1x4x8x8xbf16, #tpu.memory_space<vmem>>, vector<1x1x8x8xbf16>
    %34 = vector.shape_cast %33 : vector<1x1x8x8xbf16> to vector<8x8xbf16>
    %c0_30 = arith.constant 0 : index
    %c1_31 = arith.constant 1 : index
    %c0_32 = arith.constant 0 : index
    %c0_33 = arith.constant 0 : index
    %35 = vector.load %arg5[%c0_30, %c1_31, %c0_32, %c0_33] : memref<1x4x8x8xbf16, #tpu.memory_space<vmem>>, vector<1x1x8x8xbf16>
    %36 = vector.shape_cast %35 : vector<1x1x8x8xbf16> to vector<8x8xbf16>
    %cst_34 = arith.constant dense<0.000000e+00> : vector<8x8xf32>
    %37 = tpu.matmul %32, %34, %cst_34 {dimension_numbers = #tpu.dot_dimension_numbers<[1], [0], [0], [1], [0, 0, 1, 1], [], []>} : vector<8x8xbf16>, vector<8x8xbf16>, vector<8x8xf32> -> vector<8x8xf32>
    %cst_35 = arith.constant dense<0xFF800000> : vector<8xf32>
    %38 = vector.multi_reduction <maximumf>, %37, %cst_35 [1] : vector<8x8xf32> to vector<8xf32>
    %39 = vector.shape_cast %38 : vector<8xf32> to vector<8x1xf32>
    %40 = vector.broadcast %39 : vector<8x1xf32> to vector<8x8xf32>
    %41 = arith.subf %37, %40 : vector<8x8xf32>
    %42 = math.exp %41 : vector<8x8xf32>
    %cst_36 = arith.constant dense<0.000000e+00> : vector<8xf32>
    %43 = vector.multi_reduction <add>, %42, %cst_36 [1] : vector<8x8xf32> to vector<8xf32>
    %44 = vector.shape_cast %43 : vector<8xf32> to vector<8x1xf32>
    %45 = vector.broadcast %44 : vector<8x1xf32> to vector<8x8xf32>
    %46 = arith.divf %42, %45 : vector<8x8xf32>
    %c0_37 = arith.constant 0 : index
    %c1_38 = arith.constant 1 : index
    %c0_39 = arith.constant 0 : index
    %c0_40 = arith.constant 0 : index
    %47 = vector.load %arg11[%c0_37, %c1_38, %c0_39, %c0_40] : memref<1x4x8x8xf32, #tpu.memory_space<vmem>>, vector<1x1x8x8xf32>
    %48 = vector.shape_cast %47 : vector<1x1x8x8xf32> to vector<8x8xf32>
    %49 = vector.shape_cast %46 : vector<8x8xf32> to vector<1x1x8x8xf32>
    tpu.vector_store %arg11[%c0_37, %c1_38, %c0_39, %c0_40], %49 {strides = array<i32>} : memref<1x4x8x8xf32, #tpu.memory_space<vmem>>, vector<1x1x8x8xf32>,
    %50 = arith.truncf %46 : vector<8x8xf32> to vector<8x8xbf16>
    %cst_41 = arith.constant dense<0.000000e+00> : vector<8x8xf32>
    %51 = tpu.matmul %50, %36, %cst_41 {dimension_numbers = #tpu.dot_dimension_numbers<[1], [1], [0], [0], [0, 0, 1, 0], [], []>} : vector<8x8xbf16>, vector<8x8xbf16>, vector<8x8xf32> -> vector<8x8xf32>
    %52 = arith.truncf %51 : vector<8x8xf32> to vector<8x8xbf16>
    %c0_42 = arith.constant 0 : index
    %c1_43 = arith.constant 1 : index
    %c0_44 = arith.constant 0 : index
    %c0_45 = arith.constant 0 : index
    %53 = vector.load %arg7[%c0_42, %c1_43, %c0_44, %c0_45] : memref<1x4x8x32xbf16, #tpu.memory_space<vmem>>, vector<1x1x8x32xbf16>
    %54 = vector.shape_cast %53 : vector<1x1x8x32xbf16> to vector<8x32xbf16>
    %cst_46 = arith.constant dense<0.000000e+00> : vector<8x32xf32>
    %55 = tpu.matmul %52, %54, %cst_46 {dimension_numbers = #tpu.dot_dimension_numbers<[1], [0], [0], [1], [0, 0, 1, 1], [], []>} : vector<8x8xbf16>, vector<8x32xbf16>, vector<8x32xf32> -> vector<8x32xf32>
    %56 = arith.addf %31, %55 : vector<8x32xf32>
    %57 = vector.extract_strided_slice %7 {offsets = [0, 16], sizes = [8, 8], strides = [1, 1]} : vector<8x32xbf16> to vector<8x8xbf16>
    %c0_47 = arith.constant 0 : index
    %c2 = arith.constant 2 : index
    %c0_48 = arith.constant 0 : index
    %c0_49 = arith.constant 0 : index
    %58 = vector.load %arg4[%c0_47, %c2, %c0_48, %c0_49] : memref<1x4x8x8xbf16, #tpu.memory_space<vmem>>, vector<1x1x8x8xbf16>
    %59 = vector.shape_cast %58 : vector<1x1x8x8xbf16> to vector<8x8xbf16>
    %c0_50 = arith.constant 0 : index
    %c2_51 = arith.constant 2 : index
    %c0_52 = arith.constant 0 : index
    %c0_53 = arith.constant 0 : index
    %60 = vector.load %arg5[%c0_50, %c2_51, %c0_52, %c0_53] : memref<1x4x8x8xbf16, #tpu.memory_space<vmem>>, vector<1x1x8x8xbf16>
    %61 = vector.shape_cast %60 : vector<1x1x8x8xbf16> to vector<8x8xbf16>
    %cst_54 = arith.constant dense<0.000000e+00> : vector<8x8xf32>
    %62 = tpu.matmul %57, %59, %cst_54 {dimension_numbers = #tpu.dot_dimension_numbers<[1], [0], [0], [1], [0, 0, 1, 1], [], []>} : vector<8x8xbf16>, vector<8x8xbf16>, vector<8x8xf32> -> vector<8x8xf32>
    %cst_55 = arith.constant dense<0xFF800000> : vector<8xf32>
    %63 = vector.multi_reduction <maximumf>, %62, %cst_55 [1] : vector<8x8xf32> to vector<8xf32>
    %64 = vector.shape_cast %63 : vector<8xf32> to vector<8x1xf32>
    %65 = vector.broadcast %64 : vector<8x1xf32> to vector<8x8xf32>
    %66 = arith.subf %62, %65 : vector<8x8xf32>
    %67 = math.exp %66 : vector<8x8xf32>
    %cst_56 = arith.constant dense<0.000000e+00> : vector<8xf32>
    %68 = vector.multi_reduction <add>, %67, %cst_56 [1] : vector<8x8xf32> to vector<8xf32>
    %69 = vector.shape_cast %68 : vector<8xf32> to vector<8x1xf32>
    %70 = vector.broadcast %69 : vector<8x1xf32> to vector<8x8xf32>
    %71 = arith.divf %67, %70 : vector<8x8xf32>
    %c0_57 = arith.constant 0 : index
    %c2_58 = arith.constant 2 : index
    %c0_59 = arith.constant 0 : index
    %c0_60 = arith.constant 0 : index
    %72 = vector.load %arg11[%c0_57, %c2_58, %c0_59, %c0_60] : memref<1x4x8x8xf32, #tpu.memory_space<vmem>>, vector<1x1x8x8xf32>
    %73 = vector.shape_cast %72 : vector<1x1x8x8xf32> to vector<8x8xf32>
    %74 = vector.shape_cast %71 : vector<8x8xf32> to vector<1x1x8x8xf32>
    tpu.vector_store %arg11[%c0_57, %c2_58, %c0_59, %c0_60], %74 {strides = array<i32>} : memref<1x4x8x8xf32, #tpu.memory_space<vmem>>, vector<1x1x8x8xf32>,
    %75 = arith.truncf %71 : vector<8x8xf32> to vector<8x8xbf16>
    %cst_61 = arith.constant dense<0.000000e+00> : vector<8x8xf32>
    %76 = tpu.matmul %75, %61, %cst_61 {dimension_numbers = #tpu.dot_dimension_numbers<[1], [1], [0], [0], [0, 0, 1, 0], [], []>} : vector<8x8xbf16>, vector<8x8xbf16>, vector<8x8xf32> -> vector<8x8xf32>
    %77 = arith.truncf %76 : vector<8x8xf32> to vector<8x8xbf16>
    %c0_62 = arith.constant 0 : index
    %c2_63 = arith.constant 2 : index
    %c0_64 = arith.constant 0 : index
    %c0_65 = arith.constant 0 : index
    %78 = vector.load %arg7[%c0_62, %c2_63, %c0_64, %c0_65] : memref<1x4x8x32xbf16, #tpu.memory_space<vmem>>, vector<1x1x8x32xbf16>
    %79 = vector.shape_cast %78 : vector<1x1x8x32xbf16> to vector<8x32xbf16>
    %cst_66 = arith.constant dense<0.000000e+00> : vector<8x32xf32>
    %80 = tpu.matmul %77, %79, %cst_66 {dimension_numbers = #tpu.dot_dimension_numbers<[1], [0], [0], [1], [0, 0, 1, 1], [], []>} : vector<8x8xbf16>, vector<8x32xbf16>, vector<8x32xf32> -> vector<8x32xf32>
    %81 = arith.addf %56, %80 : vector<8x32xf32>
    %82 = vector.extract_strided_slice %7 {offsets = [0, 24], sizes = [8, 8], strides = [1, 1]} : vector<8x32xbf16> to vector<8x8xbf16>
    %c0_67 = arith.constant 0 : index
    %c3 = arith.constant 3 : index
    %c0_68 = arith.constant 0 : index
    %c0_69 = arith.constant 0 : index
    %83 = vector.load %arg4[%c0_67, %c3, %c0_68, %c0_69] : memref<1x4x8x8xbf16, #tpu.memory_space<vmem>>, vector<1x1x8x8xbf16>
    %84 = vector.shape_cast %83 : vector<1x1x8x8xbf16> to vector<8x8xbf16>
    %c0_70 = arith.constant 0 : index
    %c3_71 = arith.constant 3 : index
    %c0_72 = arith.constant 0 : index
    %c0_73 = arith.constant 0 : index
    %85 = vector.load %arg5[%c0_70, %c3_71, %c0_72, %c0_73] : memref<1x4x8x8xbf16, #tpu.memory_space<vmem>>, vector<1x1x8x8xbf16>
    %86 = vector.shape_cast %85 : vector<1x1x8x8xbf16> to vector<8x8xbf16>
    %cst_74 = arith.constant dense<0.000000e+00> : vector<8x8xf32>
    %87 = tpu.matmul %82, %84, %cst_74 {dimension_numbers = #tpu.dot_dimension_numbers<[1], [0], [0], [1], [0, 0, 1, 1], [], []>} : vector<8x8xbf16>, vector<8x8xbf16>, vector<8x8xf32> -> vector<8x8xf32>
    %cst_75 = arith.constant dense<0xFF800000> : vector<8xf32>
    %88 = vector.multi_reduction <maximumf>, %87, %cst_75 [1] : vector<8x8xf32> to vector<8xf32>
    %89 = vector.shape_cast %88 : vector<8xf32> to vector<8x1xf32>
    %90 = vector.broadcast %89 : vector<8x1xf32> to vector<8x8xf32>
    %91 = arith.subf %87, %90 : vector<8x8xf32>
    %92 = math.exp %91 : vector<8x8xf32>
    %cst_76 = arith.constant dense<0.000000e+00> : vector<8xf32>
    %93 = vector.multi_reduction <add>, %92, %cst_76 [1] : vector<8x8xf32> to vector<8xf32>
    %94 = vector.shape_cast %93 : vector<8xf32> to vector<8x1xf32>
    %95 = vector.broadcast %94 : vector<8x1xf32> to vector<8x8xf32>
    %96 = arith.divf %92, %95 : vector<8x8xf32>
    %c0_77 = arith.constant 0 : index
    %c3_78 = arith.constant 3 : index
    %c0_79 = arith.constant 0 : index
    %c0_80 = arith.constant 0 : index
    %97 = vector.load %arg11[%c0_77, %c3_78, %c0_79, %c0_80] : memref<1x4x8x8xf32, #tpu.memory_space<vmem>>, vector<1x1x8x8xf32>
    %98 = vector.shape_cast %97 : vector<1x1x8x8xf32> to vector<8x8xf32>
    %99 = vector.shape_cast %96 : vector<8x8xf32> to vector<1x1x8x8xf32>
    tpu.vector_store %arg11[%c0_77, %c3_78, %c0_79, %c0_80], %99 {strides = array<i32>} : memref<1x4x8x8xf32, #tpu.memory_space<vmem>>, vector<1x1x8x8xf32>,
    %100 = arith.truncf %96 : vector<8x8xf32> to vector<8x8xbf16>
    %cst_81 = arith.constant dense<0.000000e+00> : vector<8x8xf32>
    %101 = tpu.matmul %100, %86, %cst_81 {dimension_numbers = #tpu.dot_dimension_numbers<[1], [1], [0], [0], [0, 0, 1, 0], [], []>} : vector<8x8xbf16>, vector<8x8xbf16>, vector<8x8xf32> -> vector<8x8xf32>
    %102 = arith.truncf %101 : vector<8x8xf32> to vector<8x8xbf16>
    %c0_82 = arith.constant 0 : index
    %c3_83 = arith.constant 3 : index
    %c0_84 = arith.constant 0 : index
    %c0_85 = arith.constant 0 : index
    %103 = vector.load %arg7[%c0_82, %c3_83, %c0_84, %c0_85] : memref<1x4x8x32xbf16, #tpu.memory_space<vmem>>, vector<1x1x8x32xbf16>
    %104 = vector.shape_cast %103 : vector<1x1x8x32xbf16> to vector<8x32xbf16>
    %cst_86 = arith.constant dense<0.000000e+00> : vector<8x32xf32>
    %105 = tpu.matmul %102, %104, %cst_86 {dimension_numbers = #tpu.dot_dimension_numbers<[1], [0], [0], [1], [0, 0, 1, 1], [], []>} : vector<8x8xbf16>, vector<8x32xbf16>, vector<8x32xf32> -> vector<8x32xf32>
    %106 = arith.addf %81, %105 : vector<8x32xf32>
    %c0_i32 = arith.constant 0 : i32
    %107 = arith.cmpi eq, %arg2, %c0_i32 : i32
    %108 = arith.extui %107 : i1 to i32
    %c0_i32_87 = arith.constant 0 : i32
    %109 = arith.cmpi ne, %108, %c0_i32_87 : i32
    scf.if %109 {
      %116 = arith.extf %1 : vector<8x32xbf16> to vector<8x32xf32>
      %c0_94 = arith.constant 0 : index
      %c0_95 = arith.constant 0 : index
      %117 = vector.load %arg12[%c0_94, %c0_95] : memref<8x32xf32, #tpu.memory_space<vmem>>, vector<8x32xf32>
      tpu.vector_store %arg12[%c0_94, %c0_95], %116 {strides = array<i32>} : memref<8x32xf32, #tpu.memory_space<vmem>>, vector<8x32xf32>,
    } else {
    }
    %c0_88 = arith.constant 0 : index
    %c0_89 = arith.constant 0 : index
    %110 = vector.load %arg12[%c0_88, %c0_89] : memref<8x32xf32, #tpu.memory_space<vmem>>, vector<8x32xf32>
    %111 = arith.addf %110, %106 : vector<8x32xf32>
    %c0_90 = arith.constant 0 : index
    %c0_91 = arith.constant 0 : index
    %112 = vector.load %arg12[%c0_90, %c0_91] : memref<8x32xf32, #tpu.memory_space<vmem>>, vector<8x32xf32>
    tpu.vector_store %arg12[%c0_90, %c0_91], %111 {strides = array<i32>} : memref<8x32xf32, #tpu.memory_space<vmem>>, vector<8x32xf32>,
    %c0_i32_92 = arith.constant 0 : i32
    %113 = arith.cmpi eq, %arg2, %c0_i32_92 : i32
    %114 = arith.extui %113 : i1 to i32
    %c0_i32_93 = arith.constant 0 : i32
    %115 = arith.cmpi ne, %114, %c0_i32_93 : i32
    scf.if %115 {
      %c0_94 = arith.constant 0 : index
      %c0_95 = arith.constant 0 : index
      %116 = vector.load %arg12[%c0_94, %c0_95] : memref<8x32xf32, #tpu.memory_space<vmem>>, vector<8x32xf32>
      %cst_96 = arith.constant dense<0.000000e+00> : vector<8xf32>
      %117 = vector.multi_reduction <add>, %116, %cst_96 [1] : vector<8x32xf32> to vector<8xf32>
      %118 = vector.shape_cast %117 : vector<8xf32> to vector<8x1xf32>
      %cst_97 = arith.constant 3.200000e+01 : f32
      %119 = vector.broadcast %cst_97 : f32 to vector<8x1xf32>
      %120 = arith.divf %118, %119 : vector<8x1xf32>
      %121 = vector.broadcast %120 : vector<8x1xf32> to vector<8x32xf32>
      %122 = arith.subf %116, %121 : vector<8x32xf32>
      %123 = arith.mulf %122, %122 : vector<8x32xf32>
      %cst_98 = arith.constant dense<0.000000e+00> : vector<8xf32>
      %124 = vector.multi_reduction <add>, %123, %cst_98 [1] : vector<8x32xf32> to vector<8xf32>
      %125 = vector.shape_cast %124 : vector<8xf32> to vector<8x1xf32>
      %cst_99 = arith.constant 3.200000e+01 : f32
      %126 = vector.broadcast %cst_99 : f32 to vector<8x1xf32>
      %127 = arith.divf %125, %126 : vector<8x1xf32>
      %cst_100 = arith.constant 9.99999997E-7 : f32
      %128 = vector.broadcast %cst_100 : f32 to vector<8x1xf32>
      %129 = arith.addf %127, %128 : vector<8x1xf32>
      %130 = math.rsqrt %129 : vector<8x1xf32>
      %131 = vector.broadcast %130 : vector<8x1xf32> to vector<8x32xf32>
      %132 = arith.mulf %122, %131 : vector<8x32xf32>
      %c0_101 = arith.constant 0 : index
      %c0_102 = arith.constant 0 : index
      %133 = vector.load %arg8[%c0_101, %c0_102] : memref<1x32xf32, #tpu.memory_space<vmem>>, vector<1x32xf32>
      %134 = vector.broadcast %133 : vector<1x32xf32> to vector<8x32xf32>
      %135 = arith.mulf %132, %134 : vector<8x32xf32>
      %c0_103 = arith.constant 0 : index
      %c0_104 = arith.constant 0 : index
      %136 = vector.load %arg9[%c0_103, %c0_104] : memref<1x32xf32, #tpu.memory_space<vmem>>, vector<1x32xf32>
      %137 = vector.broadcast %136 : vector<1x32xf32> to vector<8x32xf32>
      %138 = arith.addf %135, %137 : vector<8x32xf32>
      %c0_105 = arith.constant 0 : index
      %c0_106 = arith.constant 0 : index
      %c0_107 = arith.constant 0 : index
      %139 = vector.load %arg10[%c0_105, %c0_106, %c0_107] : memref<1x8x32xf32, #tpu.memory_space<vmem>>, vector<1x8x32xf32>
      %140 = vector.shape_cast %139 : vector<1x8x32xf32> to vector<8x32xf32>
      %141 = vector.shape_cast %138 : vector<8x32xf32> to vector<1x8x32xf32>
      tpu.vector_store %arg10[%c0_105, %c0_106, %c0_107], %141 {strides = array<i32>} : memref<1x8x32xf32, #tpu.memory_space<vmem>>, vector<1x8x32xf32>,
    } else {
    }
    return
  }
  func.func @transform_0(%arg0: i32, %arg1: i32, %arg2: i32) -> (i32, i32, i32) {
    %c0_i32 = arith.constant 0 : i32
    %c0_i32_0 = arith.constant 0 : i32
    return %arg0, %arg1, %c0_i32 : i32, i32, i32
  }
  func.func @transform_1(%arg0: i32, %arg1: i32, %arg2: i32) -> (i32, i32, i32, i32) {
    %c1_i32 = arith.constant 1 : i32
    %0 = arith.muli %arg0, %c1_i32 : i32
    %1 = arith.addi %0, %arg2 : i32
    %c0_i32 = arith.constant 0 : i32
    %c0_i32_0 = arith.constant 0 : i32
    %c0_i32_1 = arith.constant 0 : i32
    %c0_i32_2 = arith.constant 0 : i32
    return %1, %c0_i32, %c0_i32_0, %c0_i32_1 : i32, i32, i32, i32
  }
  func.func @transform_2(%arg0: i32, %arg1: i32, %arg2: i32) -> (i32, i32, i32, i32) {
    %c1_i32 = arith.constant 1 : i32
    %0 = arith.muli %arg0, %c1_i32 : i32
    %1 = arith.addi %0, %arg2 : i32
    %c0_i32 = arith.constant 0 : i32
    %c0_i32_0 = arith.constant 0 : i32
    %c0_i32_1 = arith.constant 0 : i32
    %c0_i32_2 = arith.constant 0 : i32
    return %1, %c0_i32, %c0_i32_0, %c0_i32_1 : i32, i32, i32, i32
  }
  func.func @transform_3(%arg0: i32, %arg1: i32, %arg2: i32) -> (i32, i32, i32) {
    %c0_i32 = arith.constant 0 : i32
    %c0_i32_0 = arith.constant 0 : i32
    %c0_i32_1 = arith.constant 0 : i32
    return %arg2, %c0_i32, %c0_i32_0 : i32, i32, i32
  }
  func.func @transform_4(%arg0: i32, %arg1: i32, %arg2: i32) -> (i32, i32, i32, i32) {
    %c0_i32 = arith.constant 0 : i32
    %c0_i32_0 = arith.constant 0 : i32
    %c0_i32_1 = arith.constant 0 : i32
    %c0_i32_2 = arith.constant 0 : i32
    return %arg2, %c0_i32, %c0_i32_0, %c0_i32_1 : i32, i32, i32, i32
  }
  func.func @transform_5(%arg0: i32, %arg1: i32, %arg2: i32) -> (i32, i32) {
    %c0_i32 = arith.constant 0 : i32
    %c0_i32_0 = arith.constant 0 : i32
    %c0_i32_1 = arith.constant 0 : i32
    return %c0_i32, %c0_i32_0 : i32, i32
  }
  func.func @transform_6(%arg0: i32, %arg1: i32, %arg2: i32) -> (i32, i32) {
    %c0_i32 = arith.constant 0 : i32
    %c0_i32_0 = arith.constant 0 : i32
    %c0_i32_1 = arith.constant 0 : i32
    return %c0_i32, %c0_i32_0 : i32, i32
  }
  func.func @transform_7(%arg0: i32, %arg1: i32, %arg2: i32) -> (i32, i32, i32) {
    %c0_i32 = arith.constant 0 : i32
    %c0_i32_0 = arith.constant 0 : i32
    return %arg0, %arg1, %c0_i32 : i32, i32, i32
  }
  func.func @transform_8(%arg0: i32, %arg1: i32, %arg2: i32) -> (i32, i32, i32, i32) {
    %c0_i32 = arith.constant 0 : i32
    %c0_i32_0 = arith.constant 0 : i32
    return %arg0, %arg2, %arg1, %c0_i32 : i32, i32, i32, i32
  }
}

</mosaic_0001>

<bundles_post_ra>
// kernel: tpu_custom_call.1
= control target key start
LH: loop header
LB: loop body
LE: loop exit
PB: predicated region body
PF: predicated region fallthrough
CT: control target
= control target key end

     0   :  { %s2581_s0 = inlined_call_operand.hbm [shape: bf16[2,8,32], index: 0, kind: input, shape index: {}]   ;;  %s2582_s1 = inlined_call_operand.hbm [shape: bf16[2,4,8,8], index: 1, kind: input, shape index: {}]   ;;  %s2583_s2 = inlined_call_operand.hbm [shape: bf16[2,4,8,8], index: 2, kind: input, shape index: {}]   ;;  %s2584_s3 = inlined_call_operand.hbm [shape: bf16[1,32,32], index: 3, kind: input, shape index: {}]   ;;  %s2585_s4 = inlined_call_operand.hbm [shape: bf16[1,4,8,32], index: 4, kind: input, shape index: {}]   ;;  %s2586_s5 = inlined_call_operand.vmem [shape: f32[1,32], index: 5, kind: input, shape index: {}]   ;;  %s2587_s6 = inlined_call_operand.vmem [shape: f32[1,32], index: 6, kind: input, shape index: {}]   ;;  %s2588_s7 = inlined_call_operand.hbm [shape: f32[2,8,32], index: 7, kind: output, shape index: {0}]   ;;  %s2589_s8 = inlined_call_operand.hbm [shape: f32[2,4,8,8], index: 8, kind: output, shape index: {1}]  }
   0x1   :  { %2616 = sst [smem:[#allocation28_spill]] %s2582_s1 }
   0x2   :  { %2617 = sst [smem:[#allocation29_spill]] %s2584_s3 }
   0x3   :  { %2618 = sst [smem:[#allocation30_spill]] %s2586_s5 }
   0x4   :  { %2619 = sst [smem:[#allocation31_spill]] %s2587_s6 }
   0x5   :  { %2620 = sst [smem:[#allocation32_spill]] %s2588_s7 }
   0x6   :  { %2621 = sst [smem:[#allocation33_spill]] %s2589_s8 }
   0x7   :  { %14 = vsyncpa [#allocation4], 0 }
   0x8   :  { %16 = vsyncpa [#allocation4 + $0x1], 0 }
   0x9   :  { %17 = vsyncpa [#allocation7], 0 }
   0xa   :  { %19 = vsyncpa [#allocation7 + $0x1], 0 }
   0xb   :  { %20 = vsyncpa [#allocation10], 0 }
   0xc   :  { %21 = vsyncpa [#allocation5], 0 }
   0xd   :  { %23 = vsyncpa [#allocation5 + $0x1], 0 }
   0xe   :  { %24 = vsyncpa [#allocation14], 0 }
   0xf   :  { %26 = vsyncpa [#allocation14 + $0x1], 0  ;;  %s2091_s27 = smov 0   ;;  %s2093_s28 = smov 0  }
  0x10   :  { %s2095_s29 = smov 0   ;;  %s2097_s30 = smov 0  }
  0x11   :  { %s2099_s9 = smov 0   ;;  %s2101_s10 = smov 0  }
  0x12 LB: > { %2622 = sst [smem:[#allocation20_spill]] %s2008_s27  ;;  %s2122_s11 = sadd.s32 4294967295, %s2028_s10   ;;  %s2028_s10 = sphi %s2101_s10, %s32_s10   ;;  %s2024_s9 = sphi %s2099_s9, %s2673_s9   ;;  %s2020_s30 = sphi %s2097_s30, %s2672_s30   ;;  %s2016_s29 = sphi %s2095_s29, %s2668_s29   ;;  %s2012_s28 = sphi %s2093_s28, %s2671_s28   ;;  %s2008_s27 = sphi %s2091_s27, %s2670_s27  }
  0x13   : > { %2623 = sst [smem:[#allocation21_spill]] %s2016_s29  ;;  %s1469_s12 = sadd.s32 4294967294, %s2028_s10  }
  0x14   : > { %2624 = sst [smem:[#allocation22_spill]] %s2020_s30  ;;  %p67_p0 = scmp.ne.s32.totalorder %s2016_s29, %s2012_s28 }
  0x15   : > { %2625 = sst [smem:[#allocation23_spill]] %s2028_s10  ;;  %p68_p1 = scmp.eq.s32.totalorder %s2028_s10, 0 }
  0x16   : > { %p73_p2 = scmp.ne.s32.totalorder %s2012_s28, %s2008_s27  ;;  %p2592_p3 = scmp.eq.s32.totalorder %s2122_s11, 0 }
  0x17   : > { %p249_p4 = scmp.eq.s32.totalorder %s2122_s11, 1  ;;  %p2133_p5 = por %p68_p1, %p67_p0 }
  0x18   : > { %p255_p6 = scmp.eq.s32.totalorder %s1469_s12, 1  ;;  %p2139_p7 = por %p2592_p3, %p73_p2 }
  0x19   : > { %p2143_p8 = por %p249_p4, %p67_p0  ;;  %p1470_p10 = scmp.ge.s32.totalorder %s2028_s10, 1 }
  0x1a   : > { %s2627_s15 = scalar_select %p2139_p7, 1, 0 }
  0x1b   : > { %s2628_s16 = scalar_select %p2143_p8, 1, 0 }
  0x1c   : > { %p2147_p9 = por %p255_p6, %p73_p2  ;;  %p292_p11 = scmp.lt.s32.totalorder %s2028_s10, 3 }
  0x1d   : > { %2629 = sst [smem:[#allocation24_spill]] %s2628_s16  ;;  %s2030_s19 = smov [#allocation9]  }
  0x1e   : > { %s2630_s17 = scalar_select %p2147_p9, 1, 0 }
  0x1f   : > { %p2153_p12 = pnand %p1470_p10, %p292_p11  ;;  %s307_s20 = sshll.u32 %s2030_s19, 4  ;;  %s2157_s20 = int_to_ptr.vmem [resolvable:$true] %s307_s20 }
  0x20   : > { %2631 = sst [smem:[#allocation25_spill]] %s2630_s17  ;;  %s51_s22 = sadd.s32 1, %s2024_s9 }
  0x21   : > { %s2632_s18 = scalar_select %p2153_p12, 1, 0 }
  0x22   : > { %p1651_p13 = pneg %p2153_p12  ;;  %s2171_s23 = sand.u32 1, %s2016_s29  }
  0x23   : > { %p2173_p4 = scmp.ge.s32.totalorder %s51_s22, 2  ;;  %s2635_s3 = sld [smem:[#allocation29_spill]] }
  0x24   : > { %p2165_p2 = pnand %p1651_p13, %p2592_p3 }
  0x26   : > { %s2633_s21 = scalar_select %p2165_p2, 1, 0 }
  0x27   : > { %p2602_p10 = pneg %p2165_p2 }
  0x29   : > { %s1760_s12 = scalar_lea.hbm %s2635_s3, 256 }
  0x2a   : > { %p1761_p6 = scmp.ne.s32.totalorder %s2635_s3, %s1760_s12  ;;  %p1767_p0 = scmp.lt.u32.totalorder %s1760_s12, %s2635_s3 }
  0x2c   : > { %p1763_p11 = pnand %p2602_p10, %p1761_p6 }
  0x2e   : > { %p1764_p13 = pneg %p1763_p11 }
  0x30   : > { %p1769_p3 = pnand %p1767_p0, %p1764_p13 }
  0x32   : > { %1772 = shalt.err (!%p1769_p3)
}
  0x33   : > { %s1773_s25 = scalar_lea.vmem %s2157_s20, 256  ;;  %p1781_p7 = scmp.lt.s32.totalorder %s2157_s20, %s2157_s20 }
  0x34   : > { %p1774_p1 = scmp.ne.s32.totalorder %s2157_s20, %s1773_s25  ;;  %p1782_p6 = scmp.lt.s32.totalorder %s1773_s25, %s1773_s25 }
  0x36   : > { %p1776_p9 = pnand %p1774_p1, %p2602_p10  ;;  %p1783_p11 = por %p1782_p6, %p1781_p7 }
  0x38   : > { %p1777_p8 = pneg %p1776_p9 }
  0x3a   : > { %p1784_p12 = pnand %p1783_p11, %p1777_p8 }
  0x3c   : > { %1787 = shalt.err (!%p1784_p12)
}
  0x3d   : > { %s2598_s27 = smov 64   ;;  %s2032_s13 = smov 4  }
  0x3e   : > { %1654 = dma.hbm_to_vmem [thread:$0]  (!%p2165_p2), %s2635_s3, 256, %s2157_s20, [#allocation10], %s2598_s27, %s2598_s27, %s2032_s13  }
  0x3f   : > { %s2675_s22 = smov (%p2173_p4, %s51_s22), 0  ;;  %p2637_p3 = scmp.lt.s32.totalorder %s2028_s10, 2 }
  0x40   : > { %2636 = sst [smem:[#allocation26_spill]] %s2675_s22  ;;  %s362_s19 = sand.u32 1, %s2028_s10  }
  0x41   : > { %p2215_p7 = pnand %p2637_p3, %p2133_p5  ;;  %s55_s25 = ssub.s32 %s2024_s9, %s2675_s22 }
  0x42   : > { %p58_p8 = scmp.eq.s32.totalorder %s55_s25, 0  ;;  %s2600_s7 = sshll.u32 %s2171_s23, 4 }
  0x43   : > { %s2638_s12 = scalar_select %p2215_p7, 1, 0 }
  0x44   : > { %s2601_s6 = sshll.u32 %s2024_s9, 8  ;;  %s2639_s5 = sadd.s32 1, %s2016_s29 }
  0x45   : > { %s2227_s8 = scalar_select %p58_p8, %s2016_s29, %s2639_s5  }
  0x46   : > { %s2641_s1 = sld [smem:[#allocation28_spill]]  ;;  %s366_s17 = scalar_lea.vmem [#allocation6], %s2600_s7 }
  0x47   : > { %2640 = sst [smem:[#allocation27_spill]] %s2227_s8  ;;  %s374_s26 = sshll.u32 %s366_s17, 4  ;;  %s2238_s26 = int_to_ptr.vmem [resolvable:$true] %s374_s26 }
  0x48   : > { %s2240_s25 = scalar_lea.sflag [#allocation7], %s362_s19  ;;  %p2246_p9 = pneg %p2215_p7 }
  0x4a   : > { %s2642_s5 = scalar_select %p2246_p9, 1, 0 }
  0x4c   : > { %s2234_s14 = scalar_lea.hbm %s2641_s1, %s2601_s6  ;;  %s1793_s7 = scalar_lea.hbm %s2641_s1, 512 }
  0x4d   : > { %s1788_s27 = scalar_lea.hbm %s2234_s14, 256  ;;  %p1794_p1 = scmp.lt.u32.totalorder %s2234_s14, %s2641_s1 }
  0x4e   : > { %p1789_p5 = scmp.ne.s32.totalorder %s2234_s14, %s1788_s27  ;;  %p1795_p4 = scmp.lt.u32.totalorder %s1793_s7, %s1788_s27 }
  0x4f   : > { %p1797_p6 = scmp.lt.u32.totalorder %s1788_s27, %s2234_s14 }
  0x50   : > { %p1791_p12 = pnand %p2246_p9, %p1789_p5  ;;  %p1796_p13 = por %p1795_p4, %p1794_p1 }
  0x52   : > { %p1792_p0 = pneg %p1791_p12  ;;  %p1798_p11 = por %p1797_p6, %p1796_p13 }
  0x54   : > { %p1799_p3 = pnand %p1798_p11, %p1792_p0 }
  0x56   : > { %1802 = shalt.err (!%p1799_p3)
}
  0x57   : > { %s1803_s19 = scalar_lea.vmem %s2238_s26, 256  ;;  %s2033_s20 = smov [#allocation6]  }
  0x58   : > { %p1804_p8 = scmp.ne.s32.totalorder %s2238_s26, %s1803_s19  ;;  %s1808_s24 = sshll.u32 %s2033_s20, 4  ;;  %s1809_s24 = int_to_ptr.vmem [resolvable:$false] %s1808_s24 }
  0x59   : > { %s1810_s6 = scalar_lea.vmem %s1809_s24, 512  ;;  %p1811_p10 = scmp.lt.s32.totalorder %s2238_s26, %s1809_s24 }
  0x5a   : > { %p1806_p5 = pnand %p1804_p8, %p2246_p9  ;;  %p1812_p2 = scmp.lt.s32.totalorder %s1810_s6, %s1803_s19 }
  0x5c   : > { %p1807_p12 = pneg %p1806_p5  ;;  %p1813_p1 = por %p1812_p2, %p1811_p10 }
  0x5e   : > { %p1814_p4 = pnand %p1813_p1, %p1807_p12 }
  0x60   : > { %1817 = shalt.err (!%p1814_p4)
}
  0x61   : > { %s2643_s7 = smov 64   ;;  %s2644_s27 = sshll.u32 %s2024_s9, 8 }
  0x62   : > { %1664 = dma.hbm_to_vmem [thread:$0]  (!%p2215_p7), %s2234_s14, 256, %s2238_s26, %s2240_s25, %s2643_s7, %s2643_s7, %s2032_s13  }
  0x63   : > { %s2278_s19 = scalar_lea.hbm %s2583_s2, %s2644_s27  ;;  %s2645_s24 = sshll.u32 %s2171_s23, 4 }
  0x64   : > { %s388_s6 = scalar_lea.vmem [#allocation8], %s2645_s24  ;;  %s2034_s3 = smov [#allocation11]  }
  0x65   : > { %s396_s1 = sshll.u32 %s388_s6, 4  ;;  %s323_s22 = sshll.u32 %s2034_s3, 4  ;;  %s324_s22 = int_to_ptr.vmem [resolvable:$true] %s323_s22  ;;  %s2312_s1 = int_to_ptr.vmem [resolvable:$true] %s396_s1 }
  0x66   : > { %s1818_s10 = scalar_lea.hbm %s2585_s4, 256  ;;  %p2646_p10 = scmp.ne.s32.totalorder %s2633_s21, 0 }
  0x67   : > { %p1819_p2 = scmp.ne.s32.totalorder %s2585_s4, %s1818_s10  ;;  %p1825_p11 = scmp.lt.u32.totalorder %s1818_s10, %s2585_s4 }
  0x68   : > { %p2647_p0 = pneg %p2646_p10 }
  0x6a   : > { %p1821_p13 = pnand %p1819_p2, %p2647_p0 }
  0x6c   : > { %p1822_p6 = pneg %p1821_p13 }
  0x6e   : > { %p1827_p3 = pnand %p1825_p11, %p1822_p6 }
  0x70   : > { %1830 = shalt.err (!%p1827_p3)
}
  0x71   : > { %s1831_s3 = scalar_lea.vmem %s324_s22, 256  ;;  %p2648_p5 = pmov %p2647_p0 }
  0x72   : > { %p1832_p8 = scmp.ne.s32.totalorder %s324_s22, %s1831_s3  ;;  %p1839_p4 = scmp.lt.s32.totalorder %s324_s22, %s324_s22 }
  0x73   : > { %p1840_p7 = scmp.lt.s32.totalorder %s1831_s3, %s1831_s3 }
  0x74   : > { %p1834_p12 = pnand %p1832_p8, %p2648_p5 }
  0x75   : > { %p1841_p9 = por %p1840_p7, %p1839_p4 }
  0x76   : > { %p1835_p1 = pneg %p1834_p12 }
  0x78   : > { %p1842_p0 = pnand %p1841_p9, %p1835_p1 }
  0x7a   : > { %1845 = shalt.err (!%p1842_p0)
}
  0x7b   : > { %1657 = dma.hbm_to_vmem [thread:$0]  (!%p2646_p10), %s2585_s4, 256, %s324_s22, [#allocation10], %s2643_s7, %s2643_s7, %s2032_s13  }
  0x7c   : > { %s1474_s30 = sshll.u32 %s2171_s23, 2  ;;  %s1475_s10 = sshll.u32 %s2024_s9, 6 }
  0x7d   : > { %s2310_s17 = scalar_lea.hbm %s2581_s0, %s1475_s10  ;;  %s347_s21 = scalar_lea.vmem [#allocation3], %s1474_s30 }
  0x7e   : > { %s355_s20 = sshll.u32 %s347_s21, 4  ;;  %s344_s24 = scalar_lea.sflag [#allocation4], %s2171_s23  ;;  %s356_s20 = int_to_ptr.vmem [resolvable:$true] %s355_s20 }
  0x7f   : > { %s1846_s6 = scalar_lea.hbm %s2310_s17, 64  ;;  %p2649_p9 = scmp.ne.s32.totalorder %s2642_s5, 0 }
  0x80   : > { %p1847_p7 = scmp.ne.s32.totalorder %s2310_s17, %s1846_s6  ;;  %s1851_s26 = scalar_lea.hbm %s2581_s0, 128 }
  0x81   : > { %p1852_p13 = scmp.lt.u32.totalorder %s2310_s17, %s2581_s0  ;;  %p1853_p6 = scmp.lt.u32.totalorder %s1851_s26, %s1846_s6 }
  0x82   : > { %p1849_p2 = pnand %p1847_p7, %p2649_p9  ;;  %p1855_p3 = scmp.lt.u32.totalorder %s1846_s6, %s2310_s17 }
  0x83   : > { %p1854_p11 = por %p1853_p6, %p1852_p13 }
  0x84   : > { %p1850_p10 = pneg %p1849_p2 }
  0x85   : > { %p1856_p8 = por %p1855_p3, %p1854_p11 }
  0x87   : > { %p1857_p5 = pnand %p1856_p8, %p1850_p10 }
  0x89   : > { %1860 = shalt.err (!%p1857_p5)
}
  0x8a   : > { %s1861_s23 = scalar_lea.vmem %s356_s20, 64  ;;  %s2035_s29 = smov [#allocation3]  }
  0x8b   : > { %p1862_p12 = scmp.ne.s32.totalorder %s356_s20, %s1861_s23  ;;  %s1866_s30 = sshll.u32 %s2035_s29, 4  ;;  %s1867_s30 = int_to_ptr.vmem [resolvable:$false] %s1866_s30 }
  0x8c   : > { %s1868_s10 = scalar_lea.vmem %s1867_s30, 128  ;;  %p1869_p0 = scmp.lt.s32.totalorder %s356_s20, %s1867_s30 }
  0x8d   : > { %p1864_p1 = pnand %p1862_p12, %p2649_p9  ;;  %p1870_p7 = scmp.lt.s32.totalorder %s1868_s10, %s1861_s23 }
  0x8f   : > { %p1865_p4 = pneg %p1864_p1  ;;  %p1871_p2 = por %p1870_p7, %p1869_p0 }
  0x91   : > { %p1872_p6 = pnand %p1871_p2, %p1865_p4 }
  0x93   : > { %1875 = shalt.err (!%p1872_p6)
}
  0x94   : > { %p2650_p13 = scmp.ne.s32.totalorder %s2638_s12, 0  ;;  %s1876_s16 = scalar_lea.hbm %s2278_s19, 256 }
  0x95   : > { %p1877_p10 = scmp.ne.s32.totalorder %s2278_s19, %s1876_s16  ;;  %s1881_s6 = scalar_lea.hbm %s2583_s2, 512 }
  0x96   : > { %1661 = dma.hbm_to_vmem [thread:$0]  (!%p2650_p13), %s2310_s17, 64, %s356_s20, %s344_s24  }
  0x97   : > { %p1879_p11 = pnand %p1877_p10, %p2649_p9  ;;  %p1882_p8 = scmp.lt.u32.totalorder %s2278_s19, %s2583_s2 }
  0x98   : > { %p1883_p5 = scmp.lt.u32.totalorder %s1881_s6, %s1876_s16  ;;  %p1885_p1 = scmp.lt.u32.totalorder %s1876_s16, %s2278_s19 }
  0x99   : > { %p1880_p3 = pneg %p1879_p11 }
  0x9a   : > { %p1884_p12 = por %p1883_p5, %p1882_p8 }
  0x9c   : > { %p1886_p4 = por %p1885_p1, %p1884_p12 }
  0x9e   : > { %p1887_p0 = pnand %p1886_p4, %p1880_p3 }
  0xa0   : > { %1890 = shalt.err (!%p1887_p0)
}
  0xa1   : > { %s1891_s17 = scalar_lea.vmem %s2312_s1, 256  ;;  %s2036_s20 = smov [#allocation8]  }
  0xa2   : > { %p1892_p7 = scmp.ne.s32.totalorder %s2312_s1, %s1891_s17  ;;  %s1896_s24 = sshll.u32 %s2036_s20, 4  ;;  %s1897_s24 = int_to_ptr.vmem [resolvable:$false] %s1896_s24 }
  0xa3   : > { %s1898_s26 = scalar_lea.vmem %s1897_s24, 512  ;;  %p1899_p10 = scmp.lt.s32.totalorder %s2312_s1, %s1897_s24 }
  0xa4   : > { %p1894_p2 = pnand %p1892_p7, %p2649_p9  ;;  %p1900_p11 = scmp.lt.s32.totalorder %s1898_s26, %s1891_s17 }
  0xa6   : > { %p1895_p6 = pneg %p1894_p2  ;;  %p1901_p8 = por %p1900_p11, %p1899_p10 }
  0xa8   : > { %p1902_p5 = pnand %p1901_p8, %p1895_p6 }
  0xaa   : > { %1905 = shalt.err (!%p1902_p5)
}
  0xab   : > { %1667 = dma.hbm_to_vmem [thread:$0]  (!%p2650_p13), %s2278_s19, 256, %s2312_s1, %s2240_s25, %s2643_s7, %s2643_s7, %s2032_s13  }
  0xac   : > { %p2651_p9 = scmp.ne.s32.totalorder %s2632_s18, 0 }
  0xad   : > { %s2360_s5 = sand.u32 (!%p2651_p9), 1, %s2012_s28   ;;  %p2652_p3 = scmp.ne.s32.totalorder (!%p2651_p9), %s2627_s15, 0 }
  0xae   : > { %408 = sbr.rel (%p2651_p9) target bundleno = 3108 (0xc24), region = 48  ;;  %s1483_s3 = sshll.u32 (!%p2651_p9), %s2360_s5, 2 }
  0xaf   : > { %s411_s8 = scalar_lea.sflag (!%p2651_p9), [#allocation4], %s2360_s5  ;;  %s414_s23 = scalar_lea.vmem (!%p2651_p9), [#allocation3], %s1483_s3 }
  0xb5   : > { %1987 = dma.done.wait (%p2652_p3), %s411_s8, 64  }
  0xb6   : > { %1989 = vsyncadd (%p2652_p3), %s411_s8, 4294967232  ;;  %s419_s1 = sand.u32 1, %s2122_s11   ;;  %s1484_s18 = sshll.u32 %s2360_s5, 4 }
  0xb7   : > { %s420_s13 = scalar_lea.sflag [#allocation7], %s419_s1  ;;  %s2370_s12 = scalar_lea.vmem [#allocation6], %s1484_s18 }
  0xb8   : > { %1991 = dma.done.wait (%p2652_p3), %s420_s13, 512  }
  0xb9   : > { %1993 = vsyncadd (%p2652_p3), %s420_s13, 4294966784  ;;  %s2376_s25 = scalar_lea.vmem [#allocation8], %s1484_s18  ;;  %p2653_p13 = scmp.eq.s32.totalorder %s2122_s11, 0 }
  0xbb   : > { %1995 = dma.done.wait (%p2653_p13), [#allocation10], 512   ;;  %p2654_p12 = pmov %p2653_p13 }
  0xbc   : > { %v2037_v0 = vmov 0.0   ;;  %vm2038_vm0 = vmmov 0   ;;  %v1740_v1 = vld [vmem:[#allocation9] sm:$0xff]   ;;  %v1741_v2 = vld [vmem:[#allocation9 + $0x8] sm:$0xff]   ;;  %v492_v3 = vld [vmem:[%s414_s23] sm:$0xf] }
  0xbd   : > { %1997 = vsyncadd (%p2654_p12), [#allocation10], 4294966784  ;;  %1553 = vmatprep.subr.bf16.mxu0 %v2037_v0  ;;  %1557 = vmatprep.mubr.msk.bf16.mxu0 %vm2038_vm0, %v2037_v0  ;;  %v1202_v4 = vunpack.c.l.bf16 %v492_v3  ;;  %vm509_vm1 = vcmask 261120   ;;  %v555_v5 = vld [vmem:[%s2370_s12] sm:$0xf]  ;;  %vm561_vm2 = vcmask 1043456  }
  0xbe   : > { %1561 = vmatprep.subr.bf16.mxu1 %v2037_v0  ;;  %1563 = vmatprep.mubr.msk.bf16.mxu1 %vm2038_vm0, %v2037_v0  ;;  %v563_v6 = vsel %vm561_vm2, %v555_v5, 0  ;;  %v1495_v7 = vld [vmem:[%s2370_s12 + $0x4] sm:$0xf]  ;;  %vm557_vm3 = vcmask 64512   ;;  %s2039_s11 = smov 120   ;;  %s2040_s15 = smov 112  }
  0xbf   : > { %1554 = vmatpush3.bf16.msra.mxu0 %v1740_v1  ;;  %1203 = vst.msk [vmem:[#allocation2] sm:$0xff] %vm509_vm1, %v1202_v4  ;;  %1562 = vmatpush3.bf16.msra.mxu1 %v563_v6  ;;  %v677_v8 = vsel %vm561_vm2, %v1495_v7, 0  ;;  %v556_v31 = vld [vmem:[%s2376_s25] sm:$0xf]  ;;  %s1489_s7 = sshll.u32 %s2360_s5, 5  ;;  %s2041_s29 = smov 104  }
  0xc0   : > { %1555 = vmatprep.subr.bf16.mxu0 %v2037_v0  ;;  %1567 = vmatprep.subr.bf16.mxu1 %v2037_v0  ;;  %v622_v32 = vsel %vm557_vm3, %v556_v31, 0  ;;  %v1496_v40 = vld [vmem:[%s2376_s25 + $0x4] sm:$0xf]  ;;  %s2420_s19 = scalar_lea.vmem [#allocation13], %s1489_s7  ;;  %v665_v48 = vld [vmem:[#allocation11] sm:$0xf] }
  0xc1   : > { %v737_v43 = vsel %vm557_vm3, %v1496_v40, 0  ;;  %v781_v44 = vld [vmem:[#allocation11 + $0x4] sm:$0xf]  ;;  %v832_v51 = vsel %vm561_vm2, %v665_v48, 0  ;;  %v1502_v57 = vld [vmem:[%s2370_s12 + $0x8] sm:$0xf] }
  0xc2   : > { %v786_v45 = vsel %vm561_vm2, %v781_v44, 0  ;;  %v884_v61 = vsel %vm561_vm2, %v1502_v57, 0  ;;  %s2655_s30 = sld [smem:[#allocation22_spill]]  ;;  %s2656_s10 = sld [smem:[#allocation24_spill]] }
  0xc3   : > { %1556 = vmatpush3.bf16.msra.mxu0 %v1741_v2  ;;  %s1278_s27 = sshll.u32 %s2420_s19, 4  ;;  %s2657_s22 = sld [smem:[#allocation33_spill]]  ;;  %s2494_s27 = int_to_ptr.vmem [resolvable:$true] %s1278_s27 }
  0xc4   : > { %1573 = vmatprep.subr.bf16.mxu0 %v2037_v0  ;;  %s1248_s17 = scalar_lea.sflag [#allocation14], %s2360_s5  ;;  %s1906_s20 = scalar_lea.vmem %s2494_s27, 512 }
  0xc5   : > { %p1907_p1 = scmp.ne.s32.totalorder %s2494_s27, %s1906_s20  ;;  %s2042_s24 = smov [#allocation13]  }
  0xc6   : > { %1558 = vmatmul.mubr.msk.bf16.vlgmr.msra.gmra.mrb[0].mxu0 %vm509_vm1, %v492_v3  ;;  %s1910_s26 = sshll.u32 %s2042_s24, 4  ;;  %s1911_s26 = int_to_ptr.vmem [resolvable:$false] %s1910_s26 }
  0xc7   : > { %1575 = vmatprep.mubr.msk.bf16.mxu0 %vm2038_vm0, %v2037_v0  ;;  %1574 = vmatpush3.bf16.msra.mxu0 %v677_v8  ;;  %s1912_s3 = scalar_lea.vmem %s1911_s26, 1024  ;;  %p1913_p2 = scmp.lt.s32.totalorder %s2494_s27, %s1911_s26 }
  0xc8   : > { %1585 = vmatprep.subr.bf16.mxu0 %v2037_v0  ;;  %s1525_s16 = sshll.u32 %s2655_s30, 9  ;;  %p2658_p4 = scmp.ne.s32.totalorder %s2656_s10, 0 }
  0xc9   : > { %s2492_s14 = scalar_lea.hbm %s2657_s22, %s1525_s16  ;;  %p1914_p6 = scmp.lt.s32.totalorder %s1912_s3, %s1906_s20 }
  0xca   : > { %p1908_p0 = pnand %p1907_p1, %p2658_p4 }
  0xcb   : > { %p1915_p10 = por %p1914_p6, %p1913_p2 }
  0xcc   : > { %p1909_p7 = pneg %p1908_p0 }
  0xce   : > { %p1916_p11 = pnand %p1915_p10, %p1909_p7 }
 0x199   : > { %v547_v9 = vpop.f32.mrb[0].mxu0 }
 0x19a   : > { %v553_v10 = vmul.f32 0.35355338, %v547_v9  ;;  %v1559_v11 = vpop.f32.mrb[1].mxu0 }
 0x19b   : > { %v550_v12 = vpop.f32.mrb[2].mxu0 }
 0x19c   : > { %v2400_v13 = vpack.c.bf16 %v553_v10, %v553_v10  ;;  %v1560_v14 = vpop.f32.mrb[3].mxu0 }
 0x19e   : > { %671 = vrot.lane.b32.xlu0 %v2400_v13, %s2039_s11  ;;  %1564 = vmatmul.mubr.msk.bf16.vlgmr.msra.gmra.mrb[0].mxu1 %vm557_vm3, %v2400_v13 }
 0x19f   : > { %1569 = vmatprep.mubr.msk.bf16.mxu1 %vm2038_vm0, %v2037_v0  ;;  %1568 = vmatpush3.bf16.xpose.msra.mxu1 %v622_v32 }
 0x1a0   : > { %1579 = vmatprep.subr.bf16.mxu1 %v2037_v0 }
 0x210   : > { %v672_v15 = vpop.permute.xlu0 %671 }
 0x211   : > { %1576 = vmatmul.mubr.msk.bf16.vlgmr.msra.gmra.mrb[4].mxu0 %vm557_vm3, %v672_v15 }
 0x212   : > { %1587 = vmatprep.mubr.msk.bf16.mxu0 %vm2038_vm0, %v2037_v0  ;;  %1586 = vmatpush3.bf16.msra.mxu0 %v786_v45 }
 0x213   : > { %1597 = vmatprep.subr.bf16.mxu0 %v2037_v0 }
 0x271   : > { %v599_v16 = vpop.f32.mrb[0].mxu1 }
 0x272   : > { %v1565_v17 = vpop.f32.mrb[1].mxu1  ;;  %v605_v18 = vsel %vm557_vm3, %v599_v16, -inf }
 0x273   : > { %606 = vmax.xlane.f32.xlu0 %v605_v18  ;;  %v602_v19 = vpop.f32.mrb[2].mxu1 }
 0x274   : > { %v1566_v20 = vpop.f32.mrb[3].mxu1 }
 0x2e4   : > { %v713_v21 = vpop.f32.mrb[4].mxu0 }
 0x2e5   : > { %v1577_v22 = vpop.f32.mrb[5].mxu0  ;;  %v719_v23 = vsel %vm557_vm3, %v713_v21, -inf }
 0x2e6   : > { %720 = vmax.xlane.f32.xlu1 %v719_v23  ;;  %v716_v24 = vpop.f32.mrb[6].mxu0  ;;  %v1503_v22 = vld [vmem:[%s2376_s25 + $0x8] sm:$0xf] }
 0x2e7   : > { %v1578_v25 = vpop.f32.mrb[7].mxu0  ;;  %v944_v23 = vsel %vm557_vm3, %v1503_v22, 0 }
 0x300   : > { %v607_v26 = vpop.xlane.xlu0 %606 }
 0x301   : > { %v608_v27 = vsub.f32 %v599_v16, %v607_v26  ;;  %v1508_v26 = vld [vmem:[%s2370_s12 + $0xc] sm:$0xf] }
 0x303   : > { %v609_v28 = vmul.f32 1.442695, %v608_v27 }
 0x305   : > { %1742 = vpow2.f32 %v609_v28 }
 0x30f   : > { %v1743_v29 = vpop.eup %1742 }
 0x310   : > { %v611_v30 = vsel %vm557_vm3, %v1743_v29, 0.0 }
 0x311   : > { %612 = vadd.xlane.f32.xlu1 %v611_v30  ;;  %v988_v30 = vld [vmem:[#allocation11 + $0x8] sm:$0xf] }
 0x312   : > { %v993_v31 = vsel %vm561_vm2, %v988_v30, 0 }
 0x373   : > { %v721_v33 = vpop.xlane.xlu1 %720 }
 0x374   : > { %v722_v34 = vsub.f32 %v713_v21, %v721_v33 }
 0x376   : > { %v723_v35 = vmul.f32 1.442695, %v722_v34 }
 0x378   : > { %1744 = vpow2.f32 %v723_v35 }
 0x382   : > { %v1745_v36 = vpop.eup %1744 }
 0x383   : > { %v725_v37 = vsel %vm557_vm3, %v1745_v36, 0.0 }
 0x384   : > { %726 = vadd.xlane.f32.xlu1 %v725_v37 }
 0x395   : > { %878 = vrot.lane.b32.xlu1 %v2400_v13, %s2040_s15 }
 0x39e   : > { %v613_v38 = vpop.xlane.xlu1 %612 }
 0x39f   : > { %1746 = vrcp.f32 %v613_v38 }
 0x3a9   : > { %v1747_v39 = vpop.eup %1746 }
 0x3aa   : > { %v615_v41 = vmul.f32 %v1747_v39, %v1743_v29  ;;  %v1046_v29 = vsel %vm561_vm2, %v1508_v26, 0 }
 0x3ac   : > { %616 = vst.msk [vmem:[%s2420_s19] sm:$0xff] %vm557_vm3, %v615_v41  ;;  %v617_v42 = vpack.c.bf16 %v615_v41, %v615_v41 }
 0x3ae   : > { %1570 = vmatmul.mubr.msk.bf16.vlgmr.msra.gmra.mrb[4].mxu1 %vm557_vm3, %v617_v42 }
 0x3af   : > { %1580 = vmatpush3.bf16.xpose.msra.mxu1 %v737_v43  ;;  %1581 = vmatprep.mubr.msk.bf16.mxu1 %vm2038_vm0, %v2037_v0 }
 0x3b0   : > { %1591 = vmatprep.subr.bf16.mxu1 %v2037_v0 }
 0x411   : > { %v727_v46 = vpop.xlane.xlu1 %726 }
 0x412   : > { %1748 = vrcp.f32 %v727_v46 }
 0x415   : > { %v879_v1 = vpop.permute.xlu1 %878 }
 0x41c   : > { %v1749_v47 = vpop.eup %1748 }
 0x41d   : > { %v729_v49 = vmul.f32 %v1749_v47, %v1745_v36  ;;  %v1509_v47 = vld [vmem:[%s2376_s25 + $0xc] sm:$0xf] }
 0x41e   : > { %v1106_v48 = vsel %vm557_vm3, %v1509_v47, 0 }
 0x41f   : > { %1498 = vst.msk [vmem:[%s2420_s19 + $0x8] sm:$0xff] %vm557_vm3, %v729_v49  ;;  %v732_v50 = vpack.c.bf16 %v729_v49, %v729_v49 }
 0x421   : > { %1582 = vmatmul.mubr.msk.bf16.vlgmr.msra.gmra.mrb[8].mxu1 %vm557_vm3, %v732_v50 }
 0x422   : > { %1592 = vmatpush3.bf16.msra.mxu1 %v832_v51  ;;  %1593 = vmatprep.mubr.msk.bf16.mxu1 %vm2038_vm0, %v2037_v0 }
 0x423   : > { %1603 = vmatprep.subr.bf16.mxu1 %v2037_v0 }
 0x481   : > { %v658_v52 = vpop.f32.mrb[4].mxu1 }
 0x482   : > { %v664_v53 = vpack.c.bf16 %v658_v52, %v658_v52  ;;  %v1571_v54 = vpop.f32.mrb[5].mxu1 }
 0x483   : > { %v661_v55 = vpop.f32.mrb[6].mxu1 }
 0x484   : > { %v1572_v56 = vpop.f32.mrb[7].mxu1  ;;  %1594 = vmatmul.mubr.msk.bf16.vlgmr.msra.gmra.mrb[12].mxu1 %vm557_vm3, %v664_v53 }
 0x485   : > { %1605 = vmatprep.mubr.msk.bf16.mxu1 %vm2038_vm0, %v2037_v0  ;;  %1604 = vmatpush3.bf16.xpose.msra.mxu1 %v944_v23 }
 0x486   : > { %1615 = vmatprep.subr.bf16.mxu1 %v2037_v0 }
 0x4f4   : > { %v773_v58 = vpop.f32.mrb[8].mxu1 }
 0x4f5   : > { %v779_v59 = vpack.c.bf16 %v773_v58, %v773_v58  ;;  %v1583_v60 = vpop.f32.mrb[9].mxu1 }
 0x4f6   : > { %v776_v62 = vpop.f32.mrb[10].mxu1 }
 0x4f7   : > { %v1584_v63 = vpop.f32.mrb[11].mxu1  ;;  %1588 = vmatmul.mubr.msk.bf16.vlgmr.msra.gmra.mrb[8].mxu0 %vm557_vm3, %v779_v59 }
 0x4f8   : > { %1598 = vmatpush3.bf16.msra.mxu0 %v884_v61  ;;  %1599 = vmatprep.mubr.msk.bf16.mxu0 %vm2038_vm0, %v2037_v0 }
 0x4f9   : > { %1609 = vmatprep.subr.bf16.mxu0 %v2037_v0 }
 0x4ff   : > { %1600 = vmatmul.mubr.msk.bf16.vlgmr.msra.gmra.mrb[12].mxu0 %vm557_vm3, %v879_v1 }
 0x500   : > { %1611 = vmatprep.mubr.msk.bf16.mxu0 %vm2038_vm0, %v2037_v0  ;;  %1610 = vmatpush3.bf16.msra.mxu0 %v993_v31 }
 0x501   : > { %1621 = vmatprep.subr.bf16.mxu0 %v2037_v0 }
 0x557   : > { %v868_v2 = vpop.f32.mrb[12].mxu1 }
 0x558   : > { %v1595_v3 = vpop.f32.mrb[13].mxu1 }
 0x559   : > { %v871_v4 = vpop.f32.mrb[14].mxu1 }
 0x55a   : > { %v1596_v5 = vpop.f32.mrb[15].mxu1 }
 0x5ca   : > { %v822_v6 = vpop.f32.mrb[8].mxu0 }
 0x5cb   : > { %v2450_v7 = vadd.f32 %v868_v2, %v822_v6  ;;  %v1589_v8 = vpop.f32.mrb[9].mxu0  ;;  %v1204_v2 = vld [vmem:[#allocation2] sm:$0xff] }
 0x5cc   : > { %v825_v9 = vpop.f32.mrb[10].mxu0 }
 0x5cd   : > { %v1590_v10 = vpop.f32.mrb[11].mxu0 }
 0x5d2   : > { %v920_v11 = vpop.f32.mrb[12].mxu0 }
 0x5d3   : > { %v1601_v12 = vpop.f32.mrb[13].mxu0  ;;  %v926_v14 = vsel %vm557_vm3, %v920_v11, -inf }
 0x5d4   : > { %927 = vmax.xlane.f32.xlu1 %v926_v14  ;;  %v923_v15 = vpop.f32.mrb[14].mxu0 }
 0x5d5   : > { %v1602_v16 = vpop.f32.mrb[15].mxu0 }
 0x661   : > { %v928_v17 = vpop.xlane.xlu1 %927 }
 0x662   : > { %v929_v18 = vsub.f32 %v920_v11, %v928_v17 }
 0x664   : > { %v930_v19 = vmul.f32 1.442695, %v929_v18 }
 0x666   : > { %1750 = vpow2.f32 %v930_v19 }
 0x670   : > { %v1751_v20 = vpop.eup %1750 }
 0x671   : > { %v932_v21 = vsel %vm557_vm3, %v1751_v20, 0.0 }
 0x672   : > { %933 = vadd.xlane.f32.xlu0 %v932_v21 }
 0x688   : > { %1040 = vrot.lane.b32.xlu0 %v2400_v13, %s2041_s29 }
 0x6ff   : > { %v934_v24 = vpop.xlane.xlu0 %933 }
 0x700   : > { %1752 = vrcp.f32 %v934_v24 }
 0x703   : > { %v1041_v13 = vpop.permute.xlu0 %1040 }
 0x70a   : > { %v1753_v25 = vpop.eup %1752 }
 0x70b   : > { %v936_v27 = vmul.f32 %v1753_v25, %v1751_v20 }
 0x70d   : > { %1505 = vst.msk [vmem:[%s2420_s19 + $0x10] sm:$0xff] %vm557_vm3, %v936_v27  ;;  %v939_v28 = vpack.c.bf16 %v936_v27, %v936_v27 }
 0x70f   : > { %1606 = vmatmul.mubr.msk.bf16.vlgmr.msra.gmra.mrb[16].mxu1 %vm557_vm3, %v939_v28 }
 0x710   : > { %1616 = vmatpush3.bf16.msra.mxu1 %v1046_v29  ;;  %1617 = vmatprep.mubr.msk.bf16.mxu1 %vm2038_vm0, %v2037_v0 }
 0x711   : > { %1627 = vmatprep.subr.bf16.mxu1 %v2037_v0 }
 0x717   : > { %1618 = vmatmul.mubr.msk.bf16.vlgmr.msra.gmra.mrb[20].mxu1 %vm557_vm3, %v1041_v13 }
 0x718   : > { %1629 = vmatprep.mubr.msk.bf16.mxu1 %vm2038_vm0, %v2037_v0 }
 0x7e2   : > { %v980_v32 = vpop.f32.mrb[16].mxu1 }
 0x7e3   : > { %v986_v33 = vpack.c.bf16 %v980_v32, %v980_v32  ;;  %v1607_v34 = vpop.f32.mrb[17].mxu1 }
 0x7e4   : > { %v983_v35 = vpop.f32.mrb[18].mxu1 }
 0x7e5   : > { %v1608_v36 = vpop.f32.mrb[19].mxu1  ;;  %1612 = vmatmul.mubr.msk.bf16.vlgmr.msra.gmra.mrb[16].mxu0 %vm557_vm3, %v986_v33 }
 0x7e6   : > { %1623 = vmatprep.mubr.msk.bf16.mxu0 %vm2038_vm0, %v2037_v0  ;;  %1622 = vmatpush3.bf16.xpose.msra.mxu0 %v1106_v48  ;;  %v1150_v0 = vld [vmem:[#allocation11 + $0xc] sm:$0xf] }
 0x7e7   : > { %v1155_v49 = vsel %vm561_vm2, %v1150_v0, 0 }
 0x7e8   : > { %1628 = vmatpush3.bf16.msra.mxu1 %v1155_v49 }
 0x7ea   : > { %v1082_v37 = vpop.f32.mrb[20].mxu1 }
 0x7eb   : > { %v1619_v38 = vpop.f32.mrb[21].mxu1  ;;  %v1088_v39 = vsel %vm557_vm3, %v1082_v37, -inf }
 0x7ec   : > { %1089 = vmax.xlane.f32.xlu0 %v1088_v39  ;;  %v1085_v40 = vpop.f32.mrb[22].mxu1 }
 0x7ed   : > { %v1620_v41 = vpop.f32.mrb[23].mxu1 }
 0x879   : > { %v1090_v42 = vpop.xlane.xlu0 %1089 }
 0x87a   : > { %v1091_v43 = vsub.f32 %v1082_v37, %v1090_v42 }
 0x87c   : > { %v1092_v44 = vmul.f32 1.442695, %v1091_v43 }
 0x87e   : > { %1754 = vpow2.f32 %v1092_v44 }
 0x888   : > { %v1755_v45 = vpop.eup %1754 }
 0x889   : > { %v1094_v46 = vsel %vm557_vm3, %v1755_v45, 0.0 }
 0x88a   : > { %1095 = vadd.xlane.f32.xlu1 %v1094_v46 }
 0x8b8   : > { %v1029_v50 = vpop.f32.mrb[16].mxu0 }
 0x8b9   : > { %v1035_v51 = vadd.f32 %v1029_v50, %v2450_v7  ;;  %v1613_v52 = vpop.f32.mrb[17].mxu0 }
 0x8ba   : > { %v1032_v53 = vpop.f32.mrb[18].mxu0 }
 0x8bb   : > { %v1614_v54 = vpop.f32.mrb[19].mxu0 }
 0x917   : > { %v1096_v55 = vpop.xlane.xlu1 %1095 }
 0x918   : > { %1756 = vrcp.f32 %v1096_v55 }
 0x922   : > { %v1757_v56 = vpop.eup %1756 }
 0x923   : > { %v1098_v57 = vmul.f32 %v1757_v56, %v1755_v45 }
 0x925   : > { %1511 = vst.msk [vmem:[%s2420_s19 + $0x18] sm:$0xff] %vm557_vm3, %v1098_v57  ;;  %v1101_v58 = vpack.c.bf16 %v1098_v57, %v1098_v57 }
 0x927   : > { %1624 = vmatmul.mubr.msk.bf16.vlgmr.msra.gmra.mrb[20].mxu0 %vm557_vm3, %v1101_v58 }
 0x9fa   : > { %v1142_v59 = vpop.f32.mrb[20].mxu0 }
 0x9fb   : > { %v1148_v60 = vpack.c.bf16 %v1142_v59, %v1142_v59  ;;  %v1625_v61 = vpop.f32.mrb[21].mxu0 }
 0x9fc   : > { %v1145_v62 = vpop.f32.mrb[22].mxu0 }
 0x9fd   : > { %v1626_v63 = vpop.f32.mrb[23].mxu0  ;;  %1630 = vmatmul.mubr.msk.bf16.vlgmr.msra.gmra.mrb[24].mxu1 %vm557_vm3, %v1148_v60 }
 0xad0   : > { %v1191_v1 = vpop.f32.mrb[24].mxu1 }
 0xad1   : > { %v1197_v3 = vadd.f32 %v1191_v1, %v1035_v51  ;;  %v1631_v4 = vpop.f32.mrb[25].mxu1 }
 0xad2   : > { %v1194_v5 = vpop.f32.mrb[26].mxu1 }
 0xad3   : > { %v1205_v6 = vadd.f32 %v1204_v2, %v1197_v3  ;;  %v1632_v7 = vpop.f32.mrb[27].mxu1 }
 0xad5   : > { %1206 = vst.msk [vmem:[#allocation2] sm:$0xff] %vm509_vm1, %v1205_v6 }
 0xadc   : > { %v1210_v8 = vld [vmem:[#allocation2] sm:$0xff] }
 0xadd   : > { %v1211_v9 = vsel %vm509_vm1, %v1210_v8, 0.0 }
 0xade   : > { %1212 = vadd.xlane.f32.xlu1 %v1211_v9 }
 0xb6b   : > { %v1213_v10 = vpop.xlane.xlu1 %1212 }
 0xb6c   : > { %v1215_v11 = vmul.f32 0.03125, %v1213_v10 }
 0xb6e   : > { %v1216_v12 = vsub.f32 %v1210_v8, %v1215_v11 }
 0xb70   : > { %v1217_v14 = vmul.f32 %v1216_v12, %v1216_v12 }
 0xb72   : > { %v1218_v15 = vsel %vm509_vm1, %v1217_v14, 0.0 }
 0xb73   : > { %1219 = vadd.xlane.f32.xlu1 %v1218_v15 }
 0xb74   : > { %1919 = shalt.err (!%p1916_p11)
}
 0xb75   : > { %s1920_s8 = scalar_lea.hbm %s2492_s14, 512  ;;  %s1924_s18 = scalar_lea.hbm %s2657_s22, 1024 }
 0xb76   : > { %p1921_p8 = scmp.ne.s32.totalorder %s2492_s14, %s1920_s8  ;;  %p1925_p3 = scmp.lt.u32.totalorder %s2492_s14, %s2657_s22 }
 0xb77   : > { %p1926_p13 = scmp.lt.u32.totalorder %s1924_s18, %s1920_s8  ;;  %p1928_p1 = scmp.lt.u32.totalorder %s1920_s8, %s2492_s14 }
 0xb78   : > { %p1922_p5 = pnand %p1921_p8, %p2658_p4 }
 0xb79   : > { %p1927_p12 = por %p1926_p13, %p1925_p3 }
 0xb7a   : > { %p1923_p9 = pneg %p1922_p5 }
 0xb7b   : > { %p1929_p0 = por %p1928_p1, %p1927_p12 }
 0xb7d   : > { %p1930_p7 = pnand %p1929_p0, %p1923_p9 }
 0xb7f   : > { %1933 = shalt.err (!%p1930_p7)
}
 0xb80   : > { %s2043_s25 = smov 128   ;;  %s2044_s11 = smov 8  }
 0xb81   : > { %1648 = dma.vmem_to_hbm [thread:$0]  (%p2658_p4), %s2494_s27, 512, %s2492_s14, %s1248_s17, %s2043_s25, %s2043_s25, %s2044_s11  }
 0xb82   : > { %s1488_s15 = sshll.u32 %s2360_s5, 3  ;;  %s2659_s29 = sld [smem:[#allocation30_spill]] }
 0xb83   : > { %s2660_s6 = sld [smem:[#allocation31_spill]]  ;;  %s1518_s20 = sshll.u32 %s2655_s30, 7 }
 0xb84   : > { %s480_s24 = scalar_lea.vmem [#allocation12], %s1488_s15  ;;  %s2661_s26 = sld [smem:[#allocation32_spill]] }
 0xb85   : > { %s1262_s27 = sshll.u32 %s480_s24, 4  ;;  %s1243_s8 = scalar_lea.sflag [#allocation5], %s2360_s5  ;;  %s2533_s27 = int_to_ptr.vmem [resolvable:$true] %s1262_s27 }
 0xb86   : > { %s1934_s23 = scalar_lea.vmem %s2533_s27, 128  ;;  %s2045_s30 = smov [#allocation12]  }
 0xb87   : > { %p1935_p2 = scmp.ne.s32.totalorder %s2533_s27, %s1934_s23  ;;  %s1938_s1 = sshll.u32 %s2045_s30, 4  ;;  %s1939_s1 = int_to_ptr.vmem [resolvable:$false] %s1938_s1 }
 0xb88   : > { %v1514_v20 = vld [vmem:[%s2659_s29] ss:$0 sm:$0xff]  ;;  %s1940_s18 = scalar_lea.vmem %s1939_s1, 256  ;;  %p1941_p11 = scmp.lt.s32.totalorder %s2533_s27, %s1939_s1 }
 0xb89   : > { %v1515_v22 = vld [vmem:[%s2660_s6] ss:$0 sm:$0xff]  ;;  %p1936_p6 = pnand %p1935_p2, %p2658_p4  ;;  %p1942_p8 = scmp.lt.s32.totalorder %s1940_s18, %s1934_s23 }
 0xb8a   : > { %s2531_s3 = scalar_lea.hbm %s2661_s26, %s1518_s20 }
 0xb8b   : > { %p1937_p10 = pneg %p1936_p6  ;;  %p1943_p5 = por %p1942_p8, %p1941_p11 }
 0xb8d   : > { %p1944_p9 = pnand %p1943_p5, %p1937_p10 }
 0xc00   : > { %v1220_v16 = vpop.xlane.xlu1 %1219 }
 0xc01   : > { %v1221_v17 = vmul.f32 0.03125, %v1220_v16 }
 0xc03   : > { %v1222_v18 = vadd.f32 1e-06, %v1221_v17 }
 0xc05   : > { %1758 = vrsqrt.f32 %v1222_v18 }
 0xc0f   : > { %v1759_v19 = vpop.eup %1758 }
 0xc10   : > { %v1224_v21 = vmul.f32 %v1759_v19, %v1216_v12 }
 0xc12   : > { %v1232_v23 = vmul.f32 %v1514_v20, %v1224_v21 }
 0xc14   : > { %v1240_v24 = vadd.f32 %v1515_v22, %v1232_v23 }
 0xc16   : > { %1241 = vst.msk [vmem:[%s480_s24] sm:$0xff] %vm509_vm1, %v1240_v24 }
 0xc17   : > { %1947 = shalt.err (!%p1944_p9)
}
 0xc18   : > { %s1948_s5 = scalar_lea.hbm %s2531_s3, 128  ;;  %s1952_s25 = scalar_lea.hbm %s2661_s26, 256 }
 0xc19   : > { %p1949_p3 = scmp.ne.s32.totalorder %s2531_s3, %s1948_s5  ;;  %p1953_p1 = scmp.lt.u32.totalorder %s2531_s3, %s2661_s26 }
 0xc1a   : > { %p1954_p0 = scmp.lt.u32.totalorder %s1952_s25, %s1948_s5  ;;  %p1956_p2 = scmp.lt.u32.totalorder %s1948_s5, %s2531_s3 }
 0xc1b   : > { %p1950_p13 = pnand %p1949_p3, %p2658_p4 }
 0xc1c   : > { %p1955_p7 = por %p1954_p0, %p1953_p1 }
 0xc1d   : > { %p1951_p12 = pneg %p1950_p13 }
 0xc1e   : > { %p1957_p6 = por %p1956_p2, %p1955_p7 }
 0xc20   : > { %p1958_p10 = pnand %p1957_p6, %p1951_p12 }
 0xc22   : > { %1961 = shalt.err (!%p1958_p10)
}
 0xc23   : > { %1647 = dma.vmem_to_hbm [thread:$0]  (%p2658_p4), %s2533_s27, 128, %s2531_s3, %s1243_s8  }
 0xc24 PF: > { %s2662_s7 = sld [smem:[#allocation20_spill]]  ;;  %s2663_s19 = sld [smem:[#allocation25_spill]] }
 0xc25   : > { %s2664_s29 = sld [smem:[#allocation23_spill]] }
 0xc2a   : > { %s1293_s16 = sand.u32 1, %s2662_s7   ;;  %p2665_p11 = scmp.ne.s32.totalorder %s2663_s19, 0 }
 0xc2b   : > { %p2666_p8 = scmp.ge.s32.totalorder %s2664_s29, 2  ;;  %s1294_s21 = scalar_lea.sflag [#allocation5], %s1293_s16 }
 0xc2d   : > { %p1669_p5 = pnand %p2666_p8, %p2665_p11 }
 0xc2f   : > { %1999 = dma.done.wait (!%p1669_p5), %s1294_s21, 128  }
 0xc30   : > { %2001 = vsyncadd (!%p1669_p5), %s1294_s21, 4294967168  ;;  %s1303_s6 = scalar_lea.sflag [#allocation14], %s1293_s16 }
 0xc31   : > { %2003 = dma.done.wait (!%p1669_p5), %s1303_s6, 512  }
 0xc32   : > { %2005 = vsyncadd (!%p1669_p5), %s1303_s6, 4294966784  ;;  %s32_s10 = sadd.s32 1, %s2664_s29   ;;  %s2667_s20 = sld [smem:[#allocation21_spill]] }
 0xc33   : > { %p29_p9 = scmp.ge.s32.totalorder %s32_s10, 4   ;;  %s2668_s29 = sld [smem:[#allocation27_spill]] }
 0xc34   : > { %s2669_s24 = sld [smem:[#allocation26_spill]]  ;;  %s2670_s27 = smov %s2012_s28 }
 0xc35   : > { %s2672_s30 = smov %s2024_s9  ;;  %31 = sbr.rel (!%p29_p9) target bundleno = 18 (0x12), region = 164 }
 0xc38   : > { %s2671_s28 = smov %s2667_s20 }
 0xc3a   : > { %s2673_s9 = smov %s2669_s24 }
 0xc3c   :  { %1308 = vsyncpa [#allocation4], 1 }
 0xc3d   :  { %1310 = vsyncpa [#allocation4 + $0x1], 1 }
 0xc3e   :  { %1311 = vsyncpa [#allocation7], 1 }
 0xc3f   :  { %1313 = vsyncpa [#allocation7 + $0x1], 1 }
 0xc40   :  { %1314 = vsyncpa [#allocation10], 1 }
 0xc41   :  { %1315 = vsyncpa [#allocation5], 1 }
 0xc42   :  { %1317 = vsyncpa [#allocation5 + $0x1], 1 }
 0xc43   :  { %1318 = vsyncpa [#allocation14], 1 }
 0xc44   :  { %1320 = vsyncpa [#allocation14 + $0x1], 1 }

</bundles_post_ra>
